<compile_context>
chip_gen: v6e
topology: v6e:2x2x1
jax: 0.10.0
libtpu: 0.0.40
codegen_flags: <defaults>
</compile_context>

<pallas_src>
import functools

import jax
import jax.numpy as jnp
from jax import lax
from jax.experimental import pallas as pl
from jax.experimental.pallas import tpu as pltpu


def xca_kernel(x_ref, wq_ref, wk_ref, wv_ref, temp_ref, mask_ref,
               wproj_ref, bproj_ref, o_ref, *scratch, seq_len, block_b):
    """One (block_b * N, C) slab of XCA (batch dim pre-flattened into rows).

    x_ref:     (block_b*N, C)  input tokens (batch-major rows)
    wq/wk/wv:  (C, C) bf16     qkv weight, split + transposed (y = x @ W)
    temp_ref:  (1, C) f32      per-channel temperature (head temp repeated Dh)
    mask_ref:  (C, C) f32      additive head mask: 0 in-head, -1e30 off-head
    wproj_ref: (C, C) bf16     proj weight, transposed
    bproj_ref: (1, C) f32      proj bias
    o_ref:     (block_b*N, C)  output tokens
    scratch:   optional (block_b*N, C) bf16 staging buffer (block_b > 1 only)
    """
    N = seq_len
    wq = wq_ref[...]
    wk = wk_ref[...]
    wv = wv_ref[...]
    temp = temp_ref[...]
    mask = mask_ref[...]
    eps2 = jnp.float32(1e-24)  # (F.normalize eps = 1e-12)^2

    # Token-parallel projections over the whole slab: one big MXU matmul per
    # weight instead of block_b small ones. qkv_bias=False (module default).
    x2 = x_ref[...].astype(jnp.bfloat16)
    q_all = jnp.dot(x2, wq, preferred_element_type=jnp.float32)   # (bN, C)
    k_all = jnp.dot(x2, wk, preferred_element_type=jnp.float32)
    v_all = jnp.dot(x2, wv, preferred_element_type=jnp.float32)

    out_single = None
    for i in range(block_b):  # small static unroll over the batch sub-block
        q = q_all[i * N:(i + 1) * N, :]                           # (N, C)
        k = k_all[i * N:(i + 1) * N, :]
        v = v_all[i * N:(i + 1) * N, :]

        # F.normalize(q, dim=-1) on the (B, H, Dh, N) tensor == normalize each
        # channel's length-N column of the (N, C) slab. Temperature folds into
        # the k scale (surviving block-diagonal entries have head(i)==head(j)).
        q_scale = lax.rsqrt(
            jnp.maximum(jnp.sum(q * q, axis=0, keepdims=True), eps2))
        k_scale = temp * lax.rsqrt(
            jnp.maximum(jnp.sum(k * k, axis=0, keepdims=True), eps2))
        qn = (q * q_scale).astype(jnp.bfloat16)
        kn = (k * k_scale).astype(jnp.bfloat16)

        # Cross-covariance gram over N: g = qn^T @ kn -> (C, C) (trans_a form).
        g = lax.dot_general(qn, kn, (((0,), (0,)), ((), ())),
                            preferred_element_type=jnp.float32)
        g = g + mask  # block-diagonal head structure as additive bias

        # Row softmax (lane axis); masked entries contribute exactly 0.
        m = jnp.max(g, axis=-1, keepdims=True)
        e = jnp.exp(g - m)
        s = jnp.sum(e, axis=-1, keepdims=True)
        attn = (e * pl.reciprocal(s, approx=True)).astype(jnp.bfloat16)
        # TODO(synk): attn_drop / proj_drop are nn.Dropout(0.0) -> identity.

        # out[n, i] = sum_j attn[i, j] * v[n, j]  (trans_b form).
        out = lax.dot_general(v.astype(jnp.bfloat16), attn,
                              (((1,), (1,)), ((), ())),
                              preferred_element_type=jnp.float32)  # (N, C)
        out_bf = out.astype(jnp.bfloat16)
        if block_b == 1:
            out_single = out_bf
        else:
            scratch[0][pl.ds(i * N, N), :] = out_bf

    hidden = out_single if block_b == 1 else scratch[0][...]      # (bN, C)
    y = jnp.dot(hidden, wproj_ref[...],
                preferred_element_type=jnp.float32) + bproj_ref[...]
    o_ref[...] = y.astype(o_ref.dtype)


def xca_forward(x, wqkv, temperature, wproj, bproj, num_heads, *, block_b=None):
    B, N, C = x.shape
    head_dim = C // num_heads

    if block_b is None:
        # Amortize the ~0.35us per-grid-step overhead when the per-element slab
        # is small; one batch element per step at realistic N*C. Cap the static
        # unroll at 8 and keep sublane-aligned blocks where possible.
        per_elem_bytes = 6 * N * C * 4  # rough f32 activation footprint
        block_b = 1
        for d in range(1, min(B, 8) + 1):
            if B % d != 0:
                continue
            if d * per_elem_bytes > 4 * 1024 * 1024:
                continue
            if (d * N) % 8 != 0 and d != B:
                continue
            block_b = d
    assert B % block_b == 0

    # Host-side prep: split + transpose + bf16-cast weights (no (N,3C)
    # intermediate in-kernel), per-channel temperature, additive head mask.
    wqkv_t = jnp.transpose(wqkv).astype(jnp.bfloat16)                # (C, 3C)
    wq_t = wqkv_t[:, 0 * C:1 * C]
    wk_t = wqkv_t[:, 1 * C:2 * C]
    wv_t = wqkv_t[:, 2 * C:3 * C]
    wproj_t = jnp.transpose(wproj).astype(jnp.bfloat16)              # (C, C)
    temp_exp = jnp.repeat(temperature.reshape(num_heads), head_dim)
    temp_exp = temp_exp.reshape(1, C).astype(jnp.float32)
    head_id = jnp.arange(C, dtype=jnp.int32) // head_dim
    mask_bias = jnp.where(head_id[:, None] == head_id[None, :],
                          0.0, -1e30).astype(jnp.float32)            # (C, C)
    bproj2 = bproj.reshape(1, C).astype(jnp.float32)

    x_flat = x.reshape(B * N, C)  # batch folded into rows (free reshape)

    const = lambda b: (0, 0)
    scratch_shapes = ([pltpu.VMEM((block_b * N, C), jnp.bfloat16)]
                      if block_b > 1 else [])
    kernel = functools.partial(xca_kernel, seq_len=N, block_b=block_b)

    y = pl.pallas_call(
        kernel,
        out_shape=jax.ShapeDtypeStruct((B * N, C), x.dtype),
        grid_spec=pltpu.PrefetchScalarGridSpec(
            num_scalar_prefetch=0,
            grid=(B // block_b,),
            in_specs=[
                pl.BlockSpec((block_b * N, C), lambda b: (b, 0)),    # x rows
                pl.BlockSpec((C, C), const),                         # Wq^T bf16
                pl.BlockSpec((C, C), const),                         # Wk^T bf16
                pl.BlockSpec((C, C), const),                         # Wv^T bf16
                pl.BlockSpec((1, C), const),                         # temperature
                pl.BlockSpec((C, C), const),                         # head mask bias
                pl.BlockSpec((C, C), const),                         # Wproj^T bf16
                pl.BlockSpec((1, C), const),                         # proj bias
            ],
            out_specs=pl.BlockSpec((block_b * N, C), lambda b: (b, 0)),
            scratch_shapes=scratch_shapes,
        ),
        compiler_params=pltpu.CompilerParams(
            dimension_semantics=("parallel",),
            vmem_limit_bytes=48 * 1024 * 1024,
        ),
    )(x_flat, wq_t, wk_t, wv_t, temp_exp, mask_bias, wproj_t, bproj2)
    return y.reshape(B, N, C)


def xca_reference(x, wqkv, temperature, wproj, bproj, num_heads):
    """Pure-JAX (f32) mirror of the PyTorch forward for verification."""
    B, N, C = x.shape
    dh = C // num_heads
    qkv = x @ wqkv.T                                                 # (B, N, 3C)
    qkv = qkv.reshape(B, N, 3, num_heads, dh).transpose(2, 0, 3, 1, 4)
    q, k, v = qkv[0], qkv[1], qkv[2]                                 # (B, H, N, Dh)
    q = jnp.swapaxes(q, -2, -1)                                      # (B, H, Dh, N)
    k = jnp.swapaxes(k, -2, -1)
    v = jnp.swapaxes(v, -2, -1)
    q = q / jnp.maximum(jnp.linalg.norm(q, axis=-1, keepdims=True), 1e-12)
    k = k / jnp.maximum(jnp.linalg.norm(k, axis=-1, keepdims=True), 1e-12)
    attn = (q @ jnp.swapaxes(k, -2, -1)) * temperature.reshape(1, num_heads, 1, 1)
    attn = jax.nn.softmax(attn, axis=-1)
    out = (attn @ v).transpose(0, 3, 1, 2).reshape(B, N, C)
    return out @ wproj.T + bproj


if __name__ == "__main__":
    # Small shapes consistent with the module: x is (B, N, C).
    B, N, C, H = 2, 16, 32, 8
    key = jax.random.PRNGKey(0)
    k_x, k_wqkv, k_wp, k_bp, k_t = jax.random.split(key, 5)

    x = jax.random.normal(k_x, (B, N, C), dtype=jnp.float32)
    # nn.Linear(dim, 3*dim, bias=False) -> weight (3C, C)
    wqkv = 0.02 * jax.random.normal(k_wqkv, (3 * C, C), dtype=jnp.float32)
    # nn.Linear(dim, dim) -> weight (C, C), bias (C,)
    wproj = 0.02 * jax.random.normal(k_wp, (C, C), dtype=jnp.float32)
    bproj = 0.02 * jax.random.normal(k_bp, (C,), dtype=jnp.float32)
    # temperature parameter, shape (H, 1, 1); init is ones, perturb so the
    # scaling path is actually exercised.
    temperature = jnp.ones((H, 1, 1), jnp.float32) + 0.1 * jax.random.normal(
        k_t, (H, 1, 1), dtype=jnp.float32)

    out = xca_forward(x, wqkv, temperature, wproj, bproj, H)
    out = jax.block_until_ready(out)

    ref = xca_reference(x, wqkv, temperature, wproj, bproj, H)
    assert out.shape == (B, N, C)
    # bf16 MXU operands (f32 accumulation) -> relaxed tolerance vs the f32 ref.
    assert jnp.allclose(out, ref, atol=1e-2, rtol=1e-2), (
        f"max abs err = {jnp.max(jnp.abs(out - ref))}")

    print("KERNEL_OK")
</pallas_src>

<mosaic_0001>
module attributes {stable_mosaic.version = 11 : i64} {
  func.func @xca_kernel(%arg0: i32, %arg1: memref<32x32xf32, #tpu.memory_space<vmem>>, %arg2: memref<32x32xbf16, #tpu.memory_space<vmem>>, %arg3: memref<32x32xbf16, #tpu.memory_space<vmem>>, %arg4: memref<32x32xbf16, #tpu.memory_space<vmem>>, %arg5: memref<1x32xf32, #tpu.memory_space<vmem>>, %arg6: memref<32x32xf32, #tpu.memory_space<vmem>>, %arg7: memref<32x32xbf16, #tpu.memory_space<vmem>>, %arg8: memref<1x32xf32, #tpu.memory_space<vmem>>, %arg9: memref<32x32xf32, #tpu.memory_space<vmem>>, %arg10: memref<32x32xbf16, #tpu.memory_space<vmem>>) attributes {dimension_semantics = [#tpu.dimension_semantics<parallel>], iteration_bounds = array<i64: 1>, scalar_prefetch = 0 : i64, scratch_operands = 1 : i64, tpu.core_type = #tpu.core_type<tc>, window_params = [{transform_indices = @transform_0, window_bounds = array<i64: 32, 32>}, {pipeline_mode = #tpu.pipeline_mode<synchronous>, transform_indices = @transform_1, window_bounds = array<i64: 32, 32>}, {pipeline_mode = #tpu.pipeline_mode<synchronous>, transform_indices = @transform_2, window_bounds = array<i64: 32, 32>}, {pipeline_mode = #tpu.pipeline_mode<synchronous>, transform_indices = @transform_3, window_bounds = array<i64: 32, 32>}, {pipeline_mode = #tpu.pipeline_mode<synchronous>, transform_indices = @transform_4, window_bounds = array<i64: 1, 32>}, {pipeline_mode = #tpu.pipeline_mode<synchronous>, transform_indices = @transform_5, window_bounds = array<i64: 32, 32>}, {pipeline_mode = #tpu.pipeline_mode<synchronous>, transform_indices = @transform_6, window_bounds = array<i64: 32, 32>}, {pipeline_mode = #tpu.pipeline_mode<synchronous>, transform_indices = @transform_7, window_bounds = array<i64: 1, 32>}, {transform_indices = @transform_8, window_bounds = array<i64: 32, 32>}]} {
    %c0 = arith.constant 0 : index
    %c0_0 = arith.constant 0 : index
    %0 = vector.load %arg2[%c0, %c0_0] : memref<32x32xbf16, #tpu.memory_space<vmem>>, vector<32x32xbf16>
    %c0_1 = arith.constant 0 : index
    %c0_2 = arith.constant 0 : index
    %1 = vector.load %arg3[%c0_1, %c0_2] : memref<32x32xbf16, #tpu.memory_space<vmem>>, vector<32x32xbf16>
    %c0_3 = arith.constant 0 : index
    %c0_4 = arith.constant 0 : index
    %2 = vector.load %arg4[%c0_3, %c0_4] : memref<32x32xbf16, #tpu.memory_space<vmem>>, vector<32x32xbf16>
    %c0_5 = arith.constant 0 : index
    %c0_6 = arith.constant 0 : index
    %3 = vector.load %arg5[%c0_5, %c0_6] : memref<1x32xf32, #tpu.memory_space<vmem>>, vector<1x32xf32>
    %c0_7 = arith.constant 0 : index
    %c0_8 = arith.constant 0 : index
    %4 = vector.load %arg6[%c0_7, %c0_8] : memref<32x32xf32, #tpu.memory_space<vmem>>, vector<32x32xf32>
    %c0_9 = arith.constant 0 : index
    %c0_10 = arith.constant 0 : index
    %5 = vector.load %arg1[%c0_9, %c0_10] : memref<32x32xf32, #tpu.memory_space<vmem>>, vector<32x32xf32>
    %6 = arith.truncf %5 : vector<32x32xf32> to vector<32x32xbf16>
    %cst = arith.constant dense<0.000000e+00> : vector<32x32xf32>
    %7 = tpu.matmul %6, %0, %cst {dimension_numbers = #tpu.dot_dimension_numbers<[1], [0], [0], [1], [0, 0, 1, 1], [], []>} : vector<32x32xbf16>, vector<32x32xbf16>, vector<32x32xf32> -> vector<32x32xf32>
    %cst_11 = arith.constant dense<0.000000e+00> : vector<32x32xf32>
    %8 = tpu.matmul %6, %1, %cst_11 {dimension_numbers = #tpu.dot_dimension_numbers<[1], [0], [0], [1], [0, 0, 1, 1], [], []>} : vector<32x32xbf16>, vector<32x32xbf16>, vector<32x32xf32> -> vector<32x32xf32>
    %cst_12 = arith.constant dense<0.000000e+00> : vector<32x32xf32>
    %9 = tpu.matmul %6, %2, %cst_12 {dimension_numbers = #tpu.dot_dimension_numbers<[1], [0], [0], [1], [0, 0, 1, 1], [], []>} : vector<32x32xbf16>, vector<32x32xbf16>, vector<32x32xf32> -> vector<32x32xf32>
    %10 = vector.extract_strided_slice %7 {offsets = [0, 0], sizes = [16, 32], strides = [1, 1]} : vector<32x32xf32> to vector<16x32xf32>
    %11 = vector.extract_strided_slice %8 {offsets = [0, 0], sizes = [16, 32], strides = [1, 1]} : vector<32x32xf32> to vector<16x32xf32>
    %12 = vector.extract_strided_slice %9 {offsets = [0, 0], sizes = [16, 32], strides = [1, 1]} : vector<32x32xf32> to vector<16x32xf32>
    %13 = arith.mulf %10, %10 : vector<16x32xf32>
    %cst_13 = arith.constant dense<0.000000e+00> : vector<32xf32>
    %14 = vector.multi_reduction <add>, %13, %cst_13 [0] : vector<16x32xf32> to vector<32xf32>
    %15 = vector.shape_cast %14 : vector<32xf32> to vector<1x32xf32>
    %cst_14 = arith.constant 1.000000e-24 : f32
    %16 = vector.broadcast %cst_14 : f32 to vector<1x32xf32>
    %17 = arith.maximumf %15, %16 : vector<1x32xf32>
    %18 = math.rsqrt %17 : vector<1x32xf32>
    %19 = arith.mulf %11, %11 : vector<16x32xf32>
    %cst_15 = arith.constant dense<0.000000e+00> : vector<32xf32>
    %20 = vector.multi_reduction <add>, %19, %cst_15 [0] : vector<16x32xf32> to vector<32xf32>
    %21 = vector.shape_cast %20 : vector<32xf32> to vector<1x32xf32>
    %cst_16 = arith.constant 1.000000e-24 : f32
    %22 = vector.broadcast %cst_16 : f32 to vector<1x32xf32>
    %23 = arith.maximumf %21, %22 : vector<1x32xf32>
    %24 = math.rsqrt %23 : vector<1x32xf32>
    %25 = arith.mulf %3, %24 : vector<1x32xf32>
    %26 = vector.broadcast %18 : vector<1x32xf32> to vector<16x32xf32>
    %27 = arith.mulf %10, %26 : vector<16x32xf32>
    %28 = arith.truncf %27 : vector<16x32xf32> to vector<16x32xbf16>
    %29 = vector.broadcast %25 : vector<1x32xf32> to vector<16x32xf32>
    %30 = arith.mulf %11, %29 : vector<16x32xf32>
    %31 = arith.truncf %30 : vector<16x32xf32> to vector<16x32xbf16>
    %cst_17 = arith.constant dense<0.000000e+00> : vector<32x32xf32>
    %32 = tpu.matmul %28, %31, %cst_17 {dimension_numbers = #tpu.dot_dimension_numbers<[0], [0], [1], [1], [0, 1, 1, 1], [], []>} : vector<16x32xbf16>, vector<16x32xbf16>, vector<32x32xf32> -> vector<32x32xf32>
    %33 = arith.addf %32, %4 : vector<32x32xf32>
    %cst_18 = arith.constant dense<0xFF800000> : vector<32xf32>
    %34 = vector.multi_reduction <maximumf>, %33, %cst_18 [1] : vector<32x32xf32> to vector<32xf32>
    %35 = vector.shape_cast %34 : vector<32xf32> to vector<32x1xf32>
    %36 = vector.broadcast %35 : vector<32x1xf32> to vector<32x32xf32>
    %37 = arith.subf %33, %36 : vector<32x32xf32>
    %38 = math.exp %37 : vector<32x32xf32>
    %cst_19 = arith.constant dense<0.000000e+00> : vector<32xf32>
    %39 = vector.multi_reduction <add>, %38, %cst_19 [1] : vector<32x32xf32> to vector<32xf32>
    %40 = vector.shape_cast %39 : vector<32xf32> to vector<32x1xf32>
    %41 = tpu.reciprocal %40 {approx = true} : vector<32x1xf32> -> vector<32x1xf32>
    %42 = vector.broadcast %41 : vector<32x1xf32> to vector<32x32xf32>
    %43 = arith.mulf %38, %42 : vector<32x32xf32>
    %44 = arith.truncf %43 : vector<32x32xf32> to vector<32x32xbf16>
    %45 = arith.truncf %12 : vector<16x32xf32> to vector<16x32xbf16>
    %cst_20 = arith.constant dense<0.000000e+00> : vector<16x32xf32>
    %46 = tpu.matmul %45, %44, %cst_20 {dimension_numbers = #tpu.dot_dimension_numbers<[1], [1], [0], [0], [0, 0, 1, 0], [], []>} : vector<16x32xbf16>, vector<32x32xbf16>, vector<16x32xf32> -> vector<16x32xf32>
    %47 = arith.truncf %46 : vector<16x32xf32> to vector<16x32xbf16>
    %c0_21 = arith.constant 0 : index
    %c0_22 = arith.constant 0 : index
    %48 = vector.load %arg10[%c0_21, %c0_22] : memref<32x32xbf16, #tpu.memory_space<vmem>>, vector<16x32xbf16>
    tpu.vector_store %arg10[%c0_21, %c0_22], %47 {strides = array<i32>} : memref<32x32xbf16, #tpu.memory_space<vmem>>, vector<16x32xbf16>,
    %49 = vector.extract_strided_slice %7 {offsets = [16, 0], sizes = [16, 32], strides = [1, 1]} : vector<32x32xf32> to vector<16x32xf32>
    %50 = vector.extract_strided_slice %8 {offsets = [16, 0], sizes = [16, 32], strides = [1, 1]} : vector<32x32xf32> to vector<16x32xf32>
    %51 = vector.extract_strided_slice %9 {offsets = [16, 0], sizes = [16, 32], strides = [1, 1]} : vector<32x32xf32> to vector<16x32xf32>
    %52 = arith.mulf %49, %49 : vector<16x32xf32>
    %cst_23 = arith.constant dense<0.000000e+00> : vector<32xf32>
    %53 = vector.multi_reduction <add>, %52, %cst_23 [0] : vector<16x32xf32> to vector<32xf32>
    %54 = vector.shape_cast %53 : vector<32xf32> to vector<1x32xf32>
    %cst_24 = arith.constant 1.000000e-24 : f32
    %55 = vector.broadcast %cst_24 : f32 to vector<1x32xf32>
    %56 = arith.maximumf %54, %55 : vector<1x32xf32>
    %57 = math.rsqrt %56 : vector<1x32xf32>
    %58 = arith.mulf %50, %50 : vector<16x32xf32>
    %cst_25 = arith.constant dense<0.000000e+00> : vector<32xf32>
    %59 = vector.multi_reduction <add>, %58, %cst_25 [0] : vector<16x32xf32> to vector<32xf32>
    %60 = vector.shape_cast %59 : vector<32xf32> to vector<1x32xf32>
    %cst_26 = arith.constant 1.000000e-24 : f32
    %61 = vector.broadcast %cst_26 : f32 to vector<1x32xf32>
    %62 = arith.maximumf %60, %61 : vector<1x32xf32>
    %63 = math.rsqrt %62 : vector<1x32xf32>
    %64 = arith.mulf %3, %63 : vector<1x32xf32>
    %65 = vector.broadcast %57 : vector<1x32xf32> to vector<16x32xf32>
    %66 = arith.mulf %49, %65 : vector<16x32xf32>
    %67 = arith.truncf %66 : vector<16x32xf32> to vector<16x32xbf16>
    %68 = vector.broadcast %64 : vector<1x32xf32> to vector<16x32xf32>
    %69 = arith.mulf %50, %68 : vector<16x32xf32>
    %70 = arith.truncf %69 : vector<16x32xf32> to vector<16x32xbf16>
    %cst_27 = arith.constant dense<0.000000e+00> : vector<32x32xf32>
    %71 = tpu.matmul %67, %70, %cst_27 {dimension_numbers = #tpu.dot_dimension_numbers<[0], [0], [1], [1], [0, 1, 1, 1], [], []>} : vector<16x32xbf16>, vector<16x32xbf16>, vector<32x32xf32> -> vector<32x32xf32>
    %72 = arith.addf %71, %4 : vector<32x32xf32>
    %cst_28 = arith.constant dense<0xFF800000> : vector<32xf32>
    %73 = vector.multi_reduction <maximumf>, %72, %cst_28 [1] : vector<32x32xf32> to vector<32xf32>
    %74 = vector.shape_cast %73 : vector<32xf32> to vector<32x1xf32>
    %75 = vector.broadcast %74 : vector<32x1xf32> to vector<32x32xf32>
    %76 = arith.subf %72, %75 : vector<32x32xf32>
    %77 = math.exp %76 : vector<32x32xf32>
    %cst_29 = arith.constant dense<0.000000e+00> : vector<32xf32>
    %78 = vector.multi_reduction <add>, %77, %cst_29 [1] : vector<32x32xf32> to vector<32xf32>
    %79 = vector.shape_cast %78 : vector<32xf32> to vector<32x1xf32>
    %80 = tpu.reciprocal %79 {approx = true} : vector<32x1xf32> -> vector<32x1xf32>
    %81 = vector.broadcast %80 : vector<32x1xf32> to vector<32x32xf32>
    %82 = arith.mulf %77, %81 : vector<32x32xf32>
    %83 = arith.truncf %82 : vector<32x32xf32> to vector<32x32xbf16>
    %84 = arith.truncf %51 : vector<16x32xf32> to vector<16x32xbf16>
    %cst_30 = arith.constant dense<0.000000e+00> : vector<16x32xf32>
    %85 = tpu.matmul %84, %83, %cst_30 {dimension_numbers = #tpu.dot_dimension_numbers<[1], [1], [0], [0], [0, 0, 1, 0], [], []>} : vector<16x32xbf16>, vector<32x32xbf16>, vector<16x32xf32> -> vector<16x32xf32>
    %86 = arith.truncf %85 : vector<16x32xf32> to vector<16x32xbf16>
    %c16 = arith.constant 16 : index
    %c0_31 = arith.constant 0 : index
    %87 = vector.load %arg10[%c16, %c0_31] : memref<32x32xbf16, #tpu.memory_space<vmem>>, vector<16x32xbf16>
    tpu.vector_store %arg10[%c16, %c0_31], %86 {strides = array<i32>} : memref<32x32xbf16, #tpu.memory_space<vmem>>, vector<16x32xbf16>,
    %c0_32 = arith.constant 0 : index
    %c0_33 = arith.constant 0 : index
    %88 = vector.load %arg10[%c0_32, %c0_33] : memref<32x32xbf16, #tpu.memory_space<vmem>>, vector<32x32xbf16>
    %c0_34 = arith.constant 0 : index
    %c0_35 = arith.constant 0 : index
    %89 = vector.load %arg7[%c0_34, %c0_35] : memref<32x32xbf16, #tpu.memory_space<vmem>>, vector<32x32xbf16>
    %cst_36 = arith.constant dense<0.000000e+00> : vector<32x32xf32>
    %90 = tpu.matmul %88, %89, %cst_36 {dimension_numbers = #tpu.dot_dimension_numbers<[1], [0], [0], [1], [0, 0, 1, 1], [], []>} : vector<32x32xbf16>, vector<32x32xbf16>, vector<32x32xf32> -> vector<32x32xf32>
    %c0_37 = arith.constant 0 : index
    %c0_38 = arith.constant 0 : index
    %91 = vector.load %arg8[%c0_37, %c0_38] : memref<1x32xf32, #tpu.memory_space<vmem>>, vector<1x32xf32>
    %92 = vector.broadcast %91 : vector<1x32xf32> to vector<32x32xf32>
    %93 = arith.addf %90, %92 : vector<32x32xf32>
    %c0_39 = arith.constant 0 : index
    %c0_40 = arith.constant 0 : index
    %94 = vector.load %arg9[%c0_39, %c0_40] : memref<32x32xf32, #tpu.memory_space<vmem>>, vector<32x32xf32>
    tpu.vector_store %arg9[%c0_39, %c0_40], %93 {strides = array<i32>} : memref<32x32xf32, #tpu.memory_space<vmem>>, vector<32x32xf32>,
    return
  }
  func.func @transform_0(%arg0: i32) -> (i32, i32) {
    %c0_i32 = arith.constant 0 : i32
    %c0_i32_0 = arith.constant 0 : i32
    return %arg0, %c0_i32 : i32, i32
  }
  func.func @transform_1(%arg0: i32) -> (i32, i32) {
    %c0_i32 = arith.constant 0 : i32
    %c0_i32_0 = arith.constant 0 : i32
    %c0_i32_1 = arith.constant 0 : i32
    return %c0_i32, %c0_i32_0 : i32, i32
  }
  func.func @transform_2(%arg0: i32) -> (i32, i32) {
    %c0_i32 = arith.constant 0 : i32
    %c0_i32_0 = arith.constant 0 : i32
    %c0_i32_1 = arith.constant 0 : i32
    return %c0_i32, %c0_i32_0 : i32, i32
  }
  func.func @transform_3(%arg0: i32) -> (i32, i32) {
    %c0_i32 = arith.constant 0 : i32
    %c0_i32_0 = arith.constant 0 : i32
    %c0_i32_1 = arith.constant 0 : i32
    return %c0_i32, %c0_i32_0 : i32, i32
  }
  func.func @transform_4(%arg0: i32) -> (i32, i32) {
    %c0_i32 = arith.constant 0 : i32
    %c0_i32_0 = arith.constant 0 : i32
    %c0_i32_1 = arith.constant 0 : i32
    return %c0_i32, %c0_i32_0 : i32, i32
  }
  func.func @transform_5(%arg0: i32) -> (i32, i32) {
    %c0_i32 = arith.constant 0 : i32
    %c0_i32_0 = arith.constant 0 : i32
    %c0_i32_1 = arith.constant 0 : i32
    return %c0_i32, %c0_i32_0 : i32, i32
  }
  func.func @transform_6(%arg0: i32) -> (i32, i32) {
    %c0_i32 = arith.constant 0 : i32
    %c0_i32_0 = arith.constant 0 : i32
    %c0_i32_1 = arith.constant 0 : i32
    return %c0_i32, %c0_i32_0 : i32, i32
  }
  func.func @transform_7(%arg0: i32) -> (i32, i32) {
    %c0_i32 = arith.constant 0 : i32
    %c0_i32_0 = arith.constant 0 : i32
    %c0_i32_1 = arith.constant 0 : i32
    return %c0_i32, %c0_i32_0 : i32, i32
  }
  func.func @transform_8(%arg0: i32) -> (i32, i32) {
    %c0_i32 = arith.constant 0 : i32
    %c0_i32_0 = arith.constant 0 : i32
    return %arg0, %c0_i32 : i32, i32
  }
}

</mosaic_0001>

<bundles_post_ra>
// kernel: tpu_custom_call.1
= control target key start
LH: loop header
LB: loop body
LE: loop exit
PB: predicated region body
PF: predicated region fallthrough
CT: control target
= control target key end

     0   :  { %13 = vsyncpa [#allocation4], 0  ;;  %s1396_s0 = inlined_call_operand.hbm [shape: f32[32,32], index: 0, kind: input, shape index: {}]   ;;  %s1397_s1 = inlined_call_operand.hbm [shape: bf16[32,32], index: 1, kind: input, shape index: {}]   ;;  %s1398_s2 = inlined_call_operand.hbm [shape: bf16[32,32], index: 2, kind: input, shape index: {}]   ;;  %s1399_s3 = inlined_call_operand.hbm [shape: bf16[32,32], index: 3, kind: input, shape index: {}]   ;;  %s1400_s4 = inlined_call_operand.vmem [shape: f32[1,32], index: 4, kind: input, shape index: {}]   ;;  %s1401_s5 = inlined_call_operand.hbm [shape: f32[32,32], index: 5, kind: input, shape index: {}]   ;;  %s1402_s6 = inlined_call_operand.hbm [shape: bf16[32,32], index: 6, kind: input, shape index: {}]   ;;  %s1403_s7 = inlined_call_operand.vmem [shape: f32[1,32], index: 7, kind: input, shape index: {}]   ;;  %s1404_s8 = inlined_call_operand.hbm [shape: f32[32,32], index: 8, kind: output, shape index: {}]  }
   0x1   :  { %14 = vsyncpa [#allocation7], 0 }
   0x2   :  { %15 = vsyncpa [#allocation10], 0 }
   0x3   :  { %16 = vsyncpa [#allocation13], 0 }
   0x4   :  { %17 = vsyncpa [#allocation5], 0  ;;  %s1213_s27 = smov [#allocation6]  }
   0x5   :  { %s35_s28 = sshll.u32 %s1213_s27, 4  ;;  %s36_s28 = int_to_ptr.vmem [resolvable:$true] %s35_s28 }
   0x6   :  { %s1071_s29 = scalar_lea.vmem %s36_s28, 256  ;;  %p1076_p1 = scmp.lt.s32.totalorder %s36_s28, %s36_s28 }
   0x7   :  { %p1072_p0 = scmp.ne.s32.totalorder %s36_s28, %s1071_s29  ;;  %p1077_p2 = scmp.lt.s32.totalorder %s1071_s29, %s1071_s29 }
   0x9   :  { %p1078_p3 = por %p1077_p2, %p1076_p1 }
   0xb   :  { %p1079_p4 = pnand %p1078_p3, %p1072_p0 }
   0xd   :  { %1082 = shalt.err (!%p1079_p4)
}
   0xe   :  { %s1214_s30 = smov 64   ;;  %s1215_s9 = smov 4  }
   0xf   :  { %41 = dma.hbm_to_vmem [thread:$0]  %s1397_s1, 256, %s36_s28, [#allocation7], %s1214_s30, %s1214_s30, %s1215_s9  }
  0x10   :  { %s1216_s12 = smov [#allocation9]   ;;  %s1217_s14 = smov [#allocation3]  }
  0x11   :  { %s59_s13 = sshll.u32 %s1216_s12, 4  ;;  %s23_s15 = sshll.u32 %s1217_s14, 4  ;;  %s60_s13 = int_to_ptr.vmem [resolvable:$true] %s59_s13  ;;  %s24_s15 = int_to_ptr.vmem [resolvable:$true] %s23_s15 }
  0x12   :  { %s1091_s16 = scalar_lea.vmem %s60_s13, 256  ;;  %p1096_p6 = scmp.lt.s32.totalorder %s60_s13, %s60_s13 }
  0x13   :  { %p1092_p5 = scmp.ne.s32.totalorder %s60_s13, %s1091_s16  ;;  %p1097_p7 = scmp.lt.s32.totalorder %s1091_s16, %s1091_s16 }
  0x15   :  { %p1098_p8 = por %p1097_p7, %p1096_p6 }
  0x17   :  { %p1099_p9 = pnand %p1098_p8, %p1092_p5 }
  0x19   :  { %1102 = shalt.err (!%p1099_p9)
}
  0x1a   :  { %65 = dma.hbm_to_vmem [thread:$0]  %s1399_s3, 256, %s60_s13, [#allocation10], %s1214_s30, %s1214_s30, %s1215_s9  }
  0x1b   :  { %s1111_s1 = scalar_lea.vmem %s24_s15, 512  ;;  %p1116_p11 = scmp.lt.s32.totalorder %s24_s15, %s24_s15 }
  0x1c   :  { %p1112_p10 = scmp.ne.s32.totalorder %s24_s15, %s1111_s1  ;;  %p1117_p12 = scmp.lt.s32.totalorder %s1111_s1, %s1111_s1 }
  0x1e   :  { %p1118_p13 = por %p1117_p12, %p1116_p11 }
  0x20   :  { %p1119_p0 = pnand %p1118_p13, %p1112_p10 }
  0x22   :  { %1122 = shalt.err (!%p1119_p0)
}
  0x23   :  { %s1218_s19 = smov 128   ;;  %s1219_s20 = smov 8  }
  0x24   :  { %29 = dma.hbm_to_vmem [thread:$0]  %s1396_s0, 512, %s24_s15, [#allocation4], %s1218_s19, %s1218_s19, %s1219_s20  }
  0x25   :  { %s1220_s23 = smov [#allocation8]   ;;  %s1221_s3 = smov [#allocation11]  }
  0x26   :  { %s47_s24 = sshll.u32 %s1220_s23, 4  ;;  %s73_s25 = sshll.u32 %s1221_s3, 4  ;;  %s48_s24 = int_to_ptr.vmem [resolvable:$true] %s47_s24  ;;  %s74_s25 = int_to_ptr.vmem [resolvable:$true] %s73_s25 }
  0x27   :  { %s1131_s26 = scalar_lea.vmem %s48_s24, 256  ;;  %p1136_p2 = scmp.lt.s32.totalorder %s48_s24, %s48_s24 }
  0x28   :  { %p1132_p1 = scmp.ne.s32.totalorder %s48_s24, %s1131_s26  ;;  %p1137_p3 = scmp.lt.s32.totalorder %s1131_s26, %s1131_s26 }
  0x2a   :  { %p1138_p4 = por %p1137_p3, %p1136_p2 }
  0x2c   :  { %p1139_p5 = pnand %p1138_p4, %p1132_p1 }
  0x2e   :  { %1142 = shalt.err (!%p1139_p5)
}
  0x2f   :  { %53 = dma.hbm_to_vmem [thread:$0]  %s1398_s2, 256, %s48_s24, [#allocation7], %s1214_s30, %s1214_s30, %s1215_s9  }
  0x30   :  { %s1151_s0 = scalar_lea.vmem %s74_s25, 512  ;;  %p1156_p7 = scmp.lt.s32.totalorder %s74_s25, %s74_s25 }
  0x31   :  { %p1152_p6 = scmp.ne.s32.totalorder %s74_s25, %s1151_s0  ;;  %p1157_p8 = scmp.lt.s32.totalorder %s1151_s0, %s1151_s0 }
  0x33   :  { %p1158_p9 = por %p1157_p8, %p1156_p7 }
  0x35   :  { %p1159_p10 = pnand %p1158_p9, %p1152_p6 }
  0x37   :  { %1162 = shalt.err (!%p1159_p10)
}
  0x38   :  { %79 = dma.hbm_to_vmem [thread:$0]  %s1401_s5, 512, %s74_s25, [#allocation10], %s1218_s19, %s1218_s19, %s1219_s20  }
  0x39   :  { %s1222_s11 = smov [#allocation12]  }
  0x3a   :  { %s85_s12 = sshll.u32 %s1222_s11, 4  ;;  %s86_s12 = int_to_ptr.vmem [resolvable:$true] %s85_s12 }
  0x3b   :  { %s1171_s13 = scalar_lea.vmem %s86_s12, 256  ;;  %p1176_p12 = scmp.lt.s32.totalorder %s86_s12, %s86_s12 }
  0x3c   :  { %p1172_p11 = scmp.ne.s32.totalorder %s86_s12, %s1171_s13  ;;  %p1177_p13 = scmp.lt.s32.totalorder %s1171_s13, %s1171_s13 }
  0x3e   :  { %p1178_p0 = por %p1177_p13, %p1176_p12 }
  0x40   :  { %p1179_p1 = pnand %p1178_p0, %p1172_p11 }
  0x42   :  { %1182 = shalt.err (!%p1179_p1)
}
  0x43   :  { %91 = dma.hbm_to_vmem [thread:$0]  %s1402_s6, 256, %s86_s12, [#allocation13], %s1214_s30, %s1214_s30, %s1215_s9  }
  0x44   :  { %1203 = dma.done.wait [#allocation4], 512  }
  0x45   :  { %1204 = vsyncadd [#allocation4], 4294966784 }
  0x46   :  { %1205 = dma.done.wait [#allocation7], 512  }
  0x47   :  { %1206 = vsyncadd [#allocation7], 4294966784 }
  0x48   :  { %1207 = dma.done.wait [#allocation10], 768  }
  0x49   :  { %1208 = vsyncadd [#allocation10], 4294966528 }
  0x4a   :  { %1209 = dma.done.wait [#allocation13], 256  }
  0x4b   :  { %1210 = vsyncadd [#allocation13], 4294967040  ;;  %v1013_v0 = vld [vmem:[#allocation6 + $0x8] sm:$0xff]   ;;  %v1014_v1 = vld [vmem:[#allocation6] sm:$0xff]   ;;  %vm148_vm0 = vcmask 261120   ;;  %vm381_vm1 = vcmask 130048  }
  0x4c   :  { %939 = vmatprep.subr.bf16.mxu0 %v1013_v0  ;;  %v130_v2 = vld [vmem:[#allocation3] sm:$0xff]  ;;  %v131_v3 = vld [vmem:[#allocation3 + $0x8] sm:$0xff]  ;;  %v132_v4 = vld [vmem:[#allocation3 + $0x10] sm:$0xff]  ;;  %vm1224_vm2 = vmmov 0   ;;  %vm542_vm3 = vcmask 257024   ;;  %s1225_s9 = smov [#allocation14]  }
  0x4d   :  { %940 = vmatpush3.bf16.msra.mxu0 %v1013_v0  ;;  %v134_v5 = vpack.c.bf16 %v131_v3, %v130_v2  ;;  %v133_v6 = vld [vmem:[#allocation3 + $0x18] sm:$0xff]  ;;  %v1016_v8 = vld [vmem:[#allocation8] sm:$0xff]   ;;  %v357_v2 = vlaneseq  ;;  %s863_s15 = sshll.u32 %s1225_s9, 4  ;;  %s864_s15 = int_to_ptr.vmem [resolvable:$true] %s863_s15 }
  0x4e   :  { %941 = vmatprep.subr.bf16.mxu0 %v1014_v1  ;;  %v1015_v7 = vld [vmem:[#allocation8 + $0x8] sm:$0xff]   ;;  %v1309_v9 = vpack.c.bf16 %v133_v6, %v132_v4  ;;  %p1188_p3 = scmp.lt.s32.totalorder %s864_s15, %s864_s15 }
  0x4f   :  { %943 = vmatprep.mubr.msk.bf16.mxu0 %vm148_vm0, %v134_v5  ;;  %951 = vmatprep.mubr.msk.bf16.mxu1 %vm148_vm0, %v134_v5  ;;  %v358_v3 = vshrl.u32 %v357_v2, 7 }
  0x50   :  { %947 = vmatprep.subr.bf16.mxu1 %v1015_v7 }
  0x51   :  { %942 = vmatpush3.bf16.msra.mxu0 %v1014_v1  ;;  %948 = vmatpush3.bf16.msra.mxu1 %v1015_v7 }
  0x52   :  { %949 = vmatprep.subr.bf16.mxu1 %v1016_v8 }
  0x54   :  { %944 = vmatmul.mubr.msk.bf16.vlgmr.msra.gmra.mxu0 %vm148_vm0, %v1309_v9 }
  0x55   :  { %950 = vmatpush3.bf16.msra.mxu1 %v1016_v8  ;;  %959 = vmatprep.mubr.msk.bf16.mxu0 %vm148_vm0, %v134_v5 }
  0x58   :  { %952 = vmatmul.mubr.msk.bf16.vlgmr.msra.gmra.mxu1 %vm148_vm0, %v1309_v9 }
 0x114   :  { %v1316_v10 = vpop.f32.mrf.mxu0 }
 0x115   :  { %v545_v12 = vmul.f32 %v1316_v10, %v1316_v10 }
 0x116   :  { %v1318_v11 = vpop.f32.mrf.mxu0 }
 0x117   :  { %v326_v15 = vmul.f32 %v1318_v11, %v1318_v11  ;;  %v547_v20 = vsel %vm148_vm0, %v545_v12, 0.0  ;;  %v125_v12 = vld [vmem:[%s1400_s4] sm:$0x1] }
 0x118   :  { %v1322_v13 = vpop.f32.mrf.mxu0  ;;  %v1324_v14 = vpop.f32.mrf.mxu1 }
 0x119   :  { %v546_v16 = vmul.f32 %v1322_v13, %v1322_v13  ;;  %v558_v17 = vmul.f32 %v1324_v14, %v1324_v14  ;;  %v328_v26 = vsel %vm148_vm0, %v326_v15, 0.0 }
 0x11a   :  { %v192_v18 = vpop.f32.mrf.mxu0  ;;  %v1332_v19 = vpop.f32.mrf.mxu1 }
 0x11b   :  { %v548_v21 = vsel %vm148_vm0, %v546_v16, 0.0  ;;  %v327_v22 = vmul.f32 %v192_v18, %v192_v18  ;;  %v339_v23 = vmul.f32 %v1332_v19, %v1332_v19  ;;  %v560_v28 = vsel %vm148_vm0, %v558_v17, 0.0 }
 0x11c   :  { %v549_v24 = vadd.f32 %v548_v21, %v547_v20  ;;  %v1338_v25 = vpop.f32.mrf.mxu1  ;;  %v359_v16 = vsub.s32 0, %v358_v3 }
 0x11d   :  { %v329_v27 = vsel %vm148_vm0, %v327_v22, 0.0  ;;  %v559_v29 = vmul.f32 %v1338_v25, %v1338_v25  ;;  %v341_v33 = vsel %vm148_vm0, %v339_v23, 0.0 }
 0x11e   :  { %v550_v30 = vrot.slane %v549_v24, 4  ;;  %v330_v31 = vadd.f32 %v329_v27, %v328_v26  ;;  %v253_v32 = vpop.f32.mrf.mxu1 }
 0x11f   :  { %v561_v34 = vsel %vm148_vm0, %v559_v29, 0.0  ;;  %v340_v35 = vmul.f32 %v253_v32, %v253_v32 }
 0x120   :  { %v551_v36 = vadd.f32 %v550_v30, %v549_v24  ;;  %v331_v37 = vrot.slane %v330_v31, 4  ;;  %v562_v38 = vadd.f32 %v561_v34, %v560_v28  ;;  %v1018_v34 = vld [vmem:[#allocation9] sm:$0xff]  }
 0x121   :  { %v342_v39 = vsel %vm148_vm0, %v340_v35, 0.0 }
 0x122   :  { %v552_v40 = vrot.slane %v551_v36, 2  ;;  %v332_v41 = vadd.f32 %v331_v37, %v330_v31  ;;  %v563_v42 = vrot.slane %v562_v38, 4  ;;  %v343_v43 = vadd.f32 %v342_v39, %v341_v33  ;;  %v1017_v33 = vld [vmem:[#allocation9 + $0x8] sm:$0xff]  }
 0x123   :  { %955 = vmatprep.subr.bf16.mxu0 %v1017_v33  ;;  %v129_v37 = vld [vmem:[#allocation11 + $0x18] sm:$0xff] }
 0x124   :  { %v553_v44 = vadd.f32 %v552_v40, %v551_v36  ;;  %v333_v45 = vrot.slane %v332_v41, 2  ;;  %v564_v46 = vadd.f32 %v563_v42, %v562_v38  ;;  %v344_v47 = vrot.slane %v343_v43, 4  ;;  %956 = vmatpush3.bf16.msra.mxu0 %v1017_v33 }
 0x125   :  { %957 = vmatprep.subr.bf16.mxu0 %v1018_v34 }
 0x126   :  { %v554_v48 = vrot.slane %v553_v44, 1  ;;  %v334_v49 = vadd.f32 %v333_v45, %v332_v41  ;;  %v565_v50 = vrot.slane %v564_v46, 2  ;;  %v345_v51 = vadd.f32 %v344_v47, %v343_v43  ;;  %v126_v43 = vld [vmem:[#allocation11] sm:$0xff] }
 0x128   :  { %v555_v52 = vadd.f32 %v554_v48, %v553_v44  ;;  %v335_v53 = vrot.slane %v334_v49, 1  ;;  %v566_v54 = vadd.f32 %v565_v50, %v564_v46  ;;  %v346_v55 = vrot.slane %v345_v51, 2  ;;  %958 = vmatpush3.bf16.msra.mxu0 %v1018_v34  ;;  %v127_v48 = vld [vmem:[#allocation11 + $0x8] sm:$0xff] }
 0x12a   :  { %v336_v56 = vadd.f32 %v335_v53, %v334_v49  ;;  %v567_v57 = vrot.slane %v566_v54, 1  ;;  %v347_v58 = vadd.f32 %v346_v55, %v345_v51  ;;  %v556_v59 = vmax.f32 %v555_v52, 1e-24 }
 0x12b   :  { %960 = vmatmul.mubr.msk.bf16.vlgmr.msra.gmra.mxu0 %vm148_vm0, %v1309_v9 }
 0x12c   :  { %v337_v60 = vmax.f32 %v336_v56, 1e-24  ;;  %v568_v61 = vadd.f32 %v567_v57, %v566_v54  ;;  %v348_v62 = vrot.slane %v347_v58, 1 }
 0x12e   :  { %1023 = vrsqrt.f32 %v337_v60  ;;  %v569_v63 = vmax.f32 %v568_v61, 1e-24  ;;  %v349_v0 = vadd.f32 %v348_v62, %v347_v58 }
 0x12f   :  { %1025 = vrsqrt.f32 %v556_v59 }
 0x130   :  { %1027 = vrsqrt.f32 %v569_v63  ;;  %v350_v1 = vmax.f32 %v349_v0, 1e-24 }
 0x132   :  { %1029 = vrsqrt.f32 %v350_v1 }
 0x13b   :  { %v1024_v4 = vpop.eup %1023 }
 0x13c   :  { %v1026_v5 = vpop.eup %1025  ;;  %v354_v6 = vmul.f32 %v1024_v4, %v192_v18  ;;  %v353_v7 = vmul.f32 %v1024_v4, %v1318_v11 }
 0x13d   :  { %v1028_v8 = vpop.eup %1027  ;;  %v573_v21 = vmul.f32 %v1026_v5, %v1322_v13  ;;  %v572_v22 = vmul.f32 %v1026_v5, %v1316_v10 }
 0x13e   :  { %v355_v15 = vpack.c.bf16 %v354_v6, %v353_v7  ;;  %v571_v17 = vmul.f32 %v1028_v8, %v125_v12 }
 0x13f   :  { %v1030_v20 = vpop.eup %1029  ;;  %v574_v27 = vpack.c.bf16 %v573_v21, %v572_v22 }
 0x140   :  { %365 = vxpose.xlu0.c.b16.start.end [1/1] (short) (narrow) %v355_v15, 32  ;;  %v579_v23 = vrot.slane %v571_v17, %v359_v16  ;;  %v352_v24 = vmul.f32 %v1030_v20, %v125_v12 }
 0x142   :  { %v581_v18 = vmul.f32 %v1324_v14, %v579_v23  ;;  %v582_v11 = vmul.f32 %v1338_v25, %v579_v23  ;;  %v360_v26 = vrot.slane %v352_v24, %v359_v16 }
 0x144   :  { %v362_v28 = vmul.f32 %v360_v26, %v1332_v19  ;;  %v363_v29 = vmul.f32 %v360_v26, %v253_v32  ;;  %v583_v30 = vpack.c.bf16 %v582_v11, %v581_v18  ;;  %v128_v19 = vld [vmem:[#allocation11 + $0x10] sm:$0xff] }
 0x145   :  { %584 = vxpose.xlu0.c.b16.start.end [1/1] (short) (narrow) %v574_v27, 32 }
 0x146   :  { %v364_v31 = vpack.c.bf16 %v363_v29, %v362_v28 }
 0x148   :  { %963 = vmatprep.subr.bf16.mxu1 %v364_v31 }
 0x149   :  { %964 = vmatpush3.bf16.msra.mxu1 %v364_v31 }
 0x14a   :  { %977 = vmatprep.subr.bf16.mxu1 %v583_v30 }
 0x1a2   :  { %v373_v10 = vpop.trf.xlu0 }
 0x1a3   :  { %965 = vmatprep.mubr.msk.bf16.mxu1 %vm381_vm1, %v373_v10 }
 0x1a6   :  { %v374_v13 = vpop.trf.xlu0 }
 0x1a7   :  { %966 = vmatmul.mubr.msk.bf16.vlgmr.msra.gmra.mxu1 %vm381_vm1, %v374_v13 }
 0x1a8   :  { %978 = vmatpush3.bf16.msra.mxu1 %v583_v30 }
 0x1aa   :  { %v592_v14 = vpop.trf.xlu0 }
 0x1ab   :  { %979 = vmatprep.mubr.msk.bf16.mxu1 %vm381_vm1, %v592_v14 }
 0x1ae   :  { %v593_v25 = vpop.trf.xlu0 }
 0x1af   :  { %980 = vmatmul.mubr.msk.bf16.vlgmr.msra.gmra.mxu1 %vm381_vm1, %v593_v25 }
 0x267   :  { %v967_v32 = vpop.f32.mrf.mxu1 }
 0x268   :  { %v431_v35 = vadd.f32 %v967_v32, %v128_v19 }
 0x269   :  { %v422_v36 = vpop.f32.mrf.mxu1 }
 0x26a   :  { %v443_v38 = vsel %vm148_vm0, %v431_v35, -inf  ;;  %v423_v47 = vadd.f32 %v422_v36, %v126_v43 }
 0x26b   :  { %444 = vmax.xlane.f32.xlu1 %v443_v38  ;;  %v968_v39 = vpop.f32.mrf.mxu1 }
 0x26c   :  { %v434_v40 = vadd.f32 %v968_v39, %v129_v37  ;;  %v437_v52 = vsel %vm148_vm0, %v423_v47, -inf }
 0x26d   :  { %v425_v41 = vpop.f32.mrf.mxu1 }
 0x26e   :  { %v446_v42 = vsel %vm148_vm0, %v434_v40, -inf  ;;  %v426_v51 = vadd.f32 %v425_v41, %v127_v48 }
 0x26f   :  { %447 = vmax.xlane.f32.xlu1 %v446_v42  ;;  %v981_v44 = vpop.f32.mrf.mxu1 }
 0x270   :  { %v649_v45 = vadd.f32 %v981_v44, %v128_v19  ;;  %v440_v55 = vsel %vm148_vm0, %v426_v51, -inf }
 0x271   :  { %v640_v46 = vpop.f32.mrf.mxu1 }
 0x272   :  { %v661_v9 = vsel %vm148_vm0, %v649_v45, -inf  ;;  %v641_v54 = vadd.f32 %v640_v46, %v126_v43 }
 0x273   :  { %662 = vmax.xlane.f32.xlu1 %v661_v9  ;;  %v982_v49 = vpop.f32.mrf.mxu1 }
 0x274   :  { %v652_v50 = vadd.f32 %v982_v49, %v129_v37  ;;  %v655_v58 = vsel %vm148_vm0, %v641_v54, -inf  ;;  %v1223_v37 = vmov 0.0  }
 0x275   :  { %v643_v56 = vpop.f32.mrf.mxu1  ;;  %969 = vmatprep.subr.bf16.mxu0 %v1223_v37  ;;  %983 = vmatprep.subr.bf16.mxu1 %v1223_v37 }
 0x276   :  { %v664_v53 = vsel %vm148_vm0, %v652_v50, -inf  ;;  %v644_v57 = vadd.f32 %v643_v56, %v127_v48  ;;  %973 = vmatprep.mubr.msk.bf16.mxu0 %vm1224_vm2, %v1223_v37  ;;  %987 = vmatprep.mubr.msk.bf16.mxu1 %vm1224_vm2, %v1223_v37 }
 0x277   :  { %438 = vmax.xlane.f32.xlu1 %v437_v52  ;;  %665 = vmax.xlane.f32.xlu0 %v664_v53  ;;  %v961_v52 = vpop.f32.mrf.mxu0 }
 0x278   :  { %v658_v59 = vsel %vm148_vm0, %v644_v57, -inf }
 0x27b   :  { %441 = vmax.xlane.f32.xlu1 %v440_v55 }
 0x27f   :  { %656 = vmax.xlane.f32.xlu1 %v655_v58 }
 0x283   :  { %659 = vmax.xlane.f32.xlu1 %v658_v59 }
 0x2f4   :  { %v445_v60 = vpop.xlane.xlu1 %444 }
 0x2f5   :  { %v451_v61 = vsub.f32 %v431_v35, %v445_v60 }
 0x2f7   :  { %v457_v62 = vmul.f32 1.442695, %v451_v61 }
 0x2f8   :  { %v448_v63 = vpop.xlane.xlu1 %447 }
 0x2f9   :  { %1031 = vpow2.f32 %v457_v62  ;;  %v452_v0 = vsub.f32 %v434_v40, %v448_v63 }
 0x2fb   :  { %v459_v1 = vmul.f32 1.442695, %v452_v0 }
 0x2fc   :  { %v663_v2 = vpop.xlane.xlu1 %662 }
 0x2fd   :  { %1033 = vpow2.f32 %v459_v1  ;;  %v669_v3 = vsub.f32 %v649_v45, %v663_v2 }
 0x2ff   :  { %v675_v4 = vmul.f32 1.442695, %v669_v3 }
 0x300   :  { %v439_v5 = vpop.xlane.xlu1 %438  ;;  %v666_v6 = vpop.xlane.xlu0 %665 }
 0x301   :  { %1035 = vpow2.f32 %v675_v4  ;;  %v449_v7 = vsub.f32 %v423_v47, %v439_v5  ;;  %v670_v8 = vsub.f32 %v652_v50, %v666_v6 }
 0x303   :  { %v453_v12 = vmul.f32 1.442695, %v449_v7  ;;  %v677_v15 = vmul.f32 1.442695, %v670_v8 }
 0x304   :  { %v442_v16 = vpop.xlane.xlu1 %441 }
 0x305   :  { %1037 = vpow2.f32 %v453_v12  ;;  %v450_v17 = vsub.f32 %v426_v51, %v442_v16  ;;  %v1019_v16 = vld [vmem:[#allocation12 + $0x8] sm:$0xff]  }
 0x306   :  { %v1032_v20 = vpop.eup %1031  ;;  %1039 = vpow2.f32 %v677_v15 }
 0x307   :  { %v455_v21 = vmul.f32 1.442695, %v450_v17  ;;  %v467_v22 = vsel %vm148_vm0, %v1032_v20, 0.0  ;;  %v1021_v17 = vld [vmem:[#allocation12] sm:$0xff]  }
 0x308   :  { %468 = vadd.xlane.f32.xlu0 %v467_v22  ;;  %v657_v23 = vpop.xlane.xlu1 %656 }
 0x309   :  { %1041 = vpow2.f32 %v455_v21  ;;  %v667_v24 = vsub.f32 %v641_v54, %v657_v23 }
 0x30a   :  { %v1034_v18 = vpop.eup %1033 }
 0x30b   :  { %v671_v11 = vmul.f32 1.442695, %v667_v24  ;;  %v470_v26 = vsel %vm148_vm0, %v1034_v18, 0.0 }
 0x30c   :  { %471 = vadd.xlane.f32.xlu1 %v470_v26  ;;  %v660_v27 = vpop.xlane.xlu1 %659 }
 0x30d   :  { %1043 = vpow2.f32 %v671_v11  ;;  %v668_v28 = vsub.f32 %v644_v57, %v660_v27  ;;  %v311_v57 = vpop.f32.mrf.mxu0 }
 0x30e   :  { %v1036_v29 = vpop.eup %1035 }
 0x30f   :  { %v673_v30 = vmul.f32 1.442695, %v668_v28  ;;  %v685_v31 = vsel %vm148_vm0, %v1036_v29, 0.0  ;;  %v962_v63 = vpop.f32.mrf.mxu0 }
 0x310   :  { %686 = vadd.xlane.f32.xlu0 %v685_v31  ;;  %v701_v15 = vpack.c.bf16 %v962_v63, %v961_v52 }
 0x311   :  { %1045 = vpow2.f32 %v673_v30  ;;  %v314_v3 = vpop.f32.mrf.mxu0 }
 0x312   :  { %v1038_v10 = vpop.eup %1037  ;;  %v483_v7 = vpack.c.bf16 %v314_v3, %v311_v57 }
 0x313   :  { %v1040_v13 = vpop.eup %1039  ;;  %v461_v14 = vsel %vm148_vm0, %v1038_v10, 0.0 }
 0x314   :  { %462 = vadd.xlane.f32.xlu0 %v461_v14  ;;  %v688_v25 = vsel %vm148_vm0, %v1040_v13, 0.0 }
 0x315   :  { %689 = vadd.xlane.f32.xlu1 %v688_v25 }
 0x316   :  { %v1042_v33 = vpop.eup %1041 }
 0x317   :  { %v464_v34 = vsel %vm148_vm0, %v1042_v33, 0.0 }
 0x319   :  { %465 = vadd.xlane.f32.xlu1 %v464_v34 }
 0x31a   :  { %v1044_v19 = vpop.eup %1043 }
 0x31b   :  { %v679_v32 = vsel %vm148_vm0, %v1044_v19, 0.0 }
 0x31c   :  { %680 = vadd.xlane.f32.xlu0 %v679_v32 }
 0x31e   :  { %v1046_v35 = vpop.eup %1045 }
 0x31f   :  { %v682_v36 = vsel %vm148_vm0, %v1046_v35, 0.0 }
 0x320   :  { %683 = vadd.xlane.f32.xlu1 %v682_v36 }
 0x391   :  { %v469_v38 = vpop.xlane.xlu0 %468 }
 0x392   :  { %1047 = vrcp.f32 %v469_v38 }
 0x395   :  { %v472_v39 = vpop.xlane.xlu1 %471 }
 0x396   :  { %1049 = vrcp.f32 %v472_v39 }
 0x399   :  { %v687_v40 = vpop.xlane.xlu0 %686 }
 0x39a   :  { %1051 = vrcp.f32 %v687_v40 }
 0x39d   :  { %v463_v41 = vpop.xlane.xlu0 %462 }
 0x39e   :  { %v690_v42 = vpop.xlane.xlu1 %689 }
 0x39f   :  { %1053 = vrcp.f32 %v690_v42  ;;  %v1048_v43 = vpop.eup %1047 }
 0x3a0   :  { %1055 = vrcp.f32 %v463_v41  ;;  %v479_v46 = vmul.f32 %v1048_v43, %v1032_v20 }
 0x3a2   :  { %v466_v44 = vpop.xlane.xlu1 %465 }
 0x3a3   :  { %v1050_v45 = vpop.eup %1049  ;;  %1057 = vrcp.f32 %v466_v44 }
 0x3a4   :  { %v480_v47 = vmul.f32 %v1050_v45, %v1034_v18 }
 0x3a5   :  { %v681_v9 = vpop.xlane.xlu0 %680 }
 0x3a6   :  { %v482_v48 = vpack.c.bf16 %v480_v47, %v479_v46  ;;  %1059 = vrcp.f32 %v681_v9 }
 0x3a7   :  { %v1052_v51 = vpop.eup %1051 }
 0x3a8   :  { %v491_v49 = vsel %vm148_vm0, %v482_v48, 0  ;;  %v697_v54 = vmul.f32 %v1052_v51, %v1036_v29 }
 0x3a9   :  { %970 = vmatpush3.bf16.xpose.msra.mxu0 %v491_v49  ;;  %v684_v50 = vpop.xlane.xlu1 %683 }
 0x3aa   :  { %1061 = vrcp.f32 %v684_v50  ;;  %971 = vmatprep.subr.bf16.mxu0 %v1223_v37 }
 0x3ac   :  { %v1054_v53 = vpop.eup %1053 }
 0x3ad   :  { %v698_v55 = vmul.f32 %v1054_v53, %v1040_v13  ;;  %v1056_v56 = vpop.eup %1055  ;;  %v900_v13 = vld [vmem:[%s1403_s7] ss:$0 sm:$0xff]  ;;  %s1183_s7 = scalar_lea.vmem %s864_s15, 512 }
 0x3ae   :  { %v477_v61 = vmul.f32 %v1056_v56, %v1038_v10  ;;  %p1184_p2 = scmp.ne.s32.totalorder %s864_s15, %s1183_s7  ;;  %p1189_p4 = scmp.lt.s32.totalorder %s1183_s7, %s1183_s7 }
 0x3af   :  { %v700_v58 = vpack.c.bf16 %v698_v55, %v697_v54 }
 0x3b0   :  { %v1058_v59 = vpop.eup %1057  ;;  %p1190_p5 = por %p1189_p4, %p1188_p3 }
 0x3b1   :  { %v709_v60 = vsel %vm148_vm0, %v700_v58, 0  ;;  %v478_v62 = vmul.f32 %v1058_v59, %v1042_v33 }
 0x3b2   :  { %984 = vmatpush3.bf16.xpose.msra.mxu1 %v709_v60  ;;  %p1191_p6 = pnand %p1190_p5, %p1184_p2 }
 0x3b3   :  { %v481_v0 = vpack.c.bf16 %v478_v62, %v477_v61  ;;  %985 = vmatprep.subr.bf16.mxu1 %v1223_v37  ;;  %v1060_v1 = vpop.eup %1059 }
 0x3b4   :  { %v695_v5 = vmul.f32 %v1060_v1, %v1044_v19 }
 0x3b5   :  { %v488_v2 = vsel %vm148_vm0, %v481_v0, 0 }
 0x3b6   :  { %972 = vmatpush3.bf16.xpose.msra.mxu0 %v488_v2 }
 0x3b7   :  { %v1062_v4 = vpop.eup %1061  ;;  %991 = vmatprep.subr.bf16.mxu0 %v1019_v16 }
 0x3b8   :  { %v696_v6 = vmul.f32 %v1062_v4, %v1046_v35 }
 0x3ba   :  { %v699_v8 = vpack.c.bf16 %v696_v6, %v695_v5 }
 0x3bc   :  { %v706_v12 = vsel %vm148_vm0, %v699_v8, 0 }
 0x3bd   :  { %974 = vmatmul.mubr.msk.bf16.vlgmr.msra.gmra.mxu0 %vm148_vm0, %v483_v7  ;;  %986 = vmatpush3.bf16.xpose.msra.mxu1 %v706_v12 }
 0x3be   :  { %992 = vmatpush3.bf16.msra.mxu0 %v1019_v16 }
 0x3bf   :  { %993 = vmatprep.subr.bf16.mxu0 %v1021_v17 }
 0x3c2   :  { %994 = vmatpush3.bf16.msra.mxu0 %v1021_v17 }
 0x3c4   :  { %988 = vmatmul.mubr.msk.bf16.vlgmr.msra.gmra.mxu1 %vm148_vm0, %v701_v15 }
 0x47d   :  { %v527_v20 = vpop.f32.mrf.mxu0 }
 0x47e   :  { %v907_v21 = vpack.c.bf16 %v527_v20, %v527_v20 }
 0x47f   :  { %v975_v22 = vpop.f32.mrf.mxu0 }
 0x480   :  { %543 = vst.msk [vmem:[#allocation2] sm:$0xf] %vm542_vm3, %v907_v21 }
 0x481   :  { %v530_v23 = vpop.f32.mrf.mxu0 }
 0x482   :  { %v908_v24 = vpack.c.bf16 %v530_v23, %v530_v23 }
 0x483   :  { %v976_v18 = vpop.f32.mrf.mxu0 }
 0x484   :  { %544 = vst.msk [vmem:[#allocation2 + $0x4] sm:$0xf] %vm542_vm3, %v908_v24  ;;  %v745_v11 = vpop.f32.mrf.mxu1 }
 0x485   :  { %v909_v26 = vpack.c.bf16 %v745_v11, %v745_v11 }
 0x486   :  { %v989_v27 = vpop.f32.mrf.mxu1 }
 0x487   :  { %760 = vst.msk [vmem:[#allocation2 + $0x8] sm:$0xf] %vm542_vm3, %v909_v26 }
 0x488   :  { %v748_v28 = vpop.f32.mrf.mxu1 }
 0x489   :  { %v910_v29 = vpack.c.bf16 %v748_v28, %v748_v28 }
 0x48a   :  { %v990_v30 = vpop.f32.mrf.mxu1 }
 0x48b   :  { %761 = vst.msk [vmem:[#allocation2 + $0xc] sm:$0xf] %vm542_vm3, %v910_v29  ;;  %v1020_v31 = vld [vmem:[#allocation2] sm:$0xff]  }
 0x48c   :  { %995 = vmatprep.mubr.msk.bf16.mxu0 %vm148_vm0, %v1020_v31 }
 0x492   :  { %v1022_v10 = vld [vmem:[#allocation2 + $0x8] sm:$0xff]  }
 0x493   :  { %996 = vmatmul.mubr.msk.bf16.vlgmr.msra.gmra.mxu0 %vm148_vm0, %v1022_v10 }
 0x553   :  { %v997_v14 = vpop.f32.mrf.mxu0 }
 0x554   :  { %v848_v25 = vadd.f32 %v997_v14, %v900_v13 }
 0x555   :  { %v839_v33 = vpop.f32.mrf.mxu0 }
 0x556   :  { %856 = vst.msk [vmem:[#allocation14 + $0x10] sm:$0xff] %vm148_vm0, %v848_v25  ;;  %v840_v34 = vadd.f32 %v900_v13, %v839_v33 }
 0x557   :  { %v998_v19 = vpop.f32.mrf.mxu0 }
 0x558   :  { %854 = vst.msk [vmem:[#allocation14] sm:$0xff] %vm148_vm0, %v840_v34  ;;  %v851_v32 = vadd.f32 %v998_v19, %v900_v13 }
 0x559   :  { %v842_v35 = vpop.f32.mrf.mxu0 }
 0x55a   :  { %857 = vst.msk [vmem:[#allocation14 + $0x18] sm:$0xff] %vm148_vm0, %v851_v32  ;;  %v843_v36 = vadd.f32 %v900_v13, %v842_v35 }
 0x55c   :  { %855 = vst.msk [vmem:[#allocation14 + $0x8] sm:$0xff] %vm148_vm0, %v843_v36 }
 0x55d   :  { %1194 = shalt.err (!%p1191_p6)
}
 0x55e   :  { %869 = dma.vmem_to_hbm [thread:$0]  %s864_s15, 512, %s1404_s8, [#allocation5], %s1218_s19, %s1218_s19, %s1219_s20  }
 0x55f   :  { %1211 = dma.done.wait [#allocation5], 512  }
 0x560   :  { %1212 = vsyncadd [#allocation5], 4294966784 }
 0x561   :  { %873 = vsyncpa [#allocation4], 1 }
 0x562   :  { %874 = vsyncpa [#allocation7], 1 }
 0x563   :  { %875 = vsyncpa [#allocation10], 1 }
 0x564   :  { %876 = vsyncpa [#allocation13], 1 }
 0x565   :  { %877 = vsyncpa [#allocation5], 1 }

</bundles_post_ra>
